<compile_context>
chip_gen: v5e
topology: v5e:2x2
jax: 0.10.0
libtpu: 0.0.40
codegen_flags: <defaults>
</compile_context>

<pallas_src>
import functools

import numpy as np
import jax
import jax.numpy as jnp
from jax.experimental import pallas as pl
from jax.experimental.pallas import tpu as pltpu


# ---------------------------------------------------------------------------
# Static helpers (PyTorch align_corners=False source-index convention:
#   src = (dst + 0.5) / s - 0.5, clamped at 0, 2-tap with edge-clamped i1)
# ---------------------------------------------------------------------------
def _phase_weights(s):
    """Per output phase r (of every s rows): (use_prev, w_a, w_b) meaning
       use_prev:  out = w_a * x[j-1] + w_b * x[j]      (row 0 clamps j-1 -> 0)
       else:      out = w_a * x[j]   + w_b * x[j+1]    (last row clamps j+1)."""
    out = []
    for r in range(s):
        f = (r + 0.5) / s - 0.5
        if f < 0:
            out.append((True, -f, 1.0 + f))
        else:
            out.append((False, 1.0 - f, f))
    return tuple(out)


def _interp_matrix(size, s):
    """(size, size*s) matrix A so that out_row = in_row @ A fuses the horizontal
    2-tap interpolation AND the phase interleave into a single MXU matmul
    (avoids lane-axis shuffles on the VPU)."""
    a = np.zeros((size, size * s), np.float32)
    for j in range(size * s):
        src = max((j + 0.5) / s - 0.5, 0.0)
        i0 = int(np.floor(src))
        lam = src - i0
        i1 = min(i0 + 1, size - 1)
        a[i0, j] += 1.0 - lam
        a[i1, j] += lam
    return a


# ---------------------------------------------------------------------------
# Kernel: one block of `bn` depthwise (H, W) planes -> (bn, s*H, s*W)
# ---------------------------------------------------------------------------
def _resample_kernel(x_ref, aw_ref, o_ref, *, scale, phase_w):
    s = scale
    x = x_ref[...].astype(jnp.float32)                      # (bn, H, W)
    bn, h, w = x.shape

    # ---- vertical pass (VPU): s two-tap phase images, edge-clamped shifts
    x_prev = jnp.concatenate([x[:, :1, :], x[:, :-1, :]], axis=1)   # clamp row 0
    x_next = jnp.concatenate([x[:, 1:, :], x[:, -1:, :]], axis=1)   # clamp row H-1
    rows = []
    for use_prev, wa, wb in phase_w:
        if use_prev:
            rows.append(wa * x_prev + wb * x)
        else:
            rows.append(wa * x + wb * x_next)
    # (bn, H, s, W) -> (bn, s*H, W): lane (minor) dim untouched -> cheap relayout.
    y = jnp.stack(rows, axis=2).reshape(bn, s * h, w)

    # ---- horizontal pass: ONE matmul does interpolation + lane interleave.
    y2 = y.reshape(bn * s * h, w)                            # collapse leading dims only
    z2 = jnp.dot(y2, aw_ref[...], preferred_element_type=jnp.float32)
    o_ref[...] = z2.reshape(bn, s * h, s * w).astype(o_ref.dtype)


# ---------------------------------------------------------------------------
# Wrapper
# ---------------------------------------------------------------------------
def _pick_block(n, h, w, s, itemsize):
    # Per-plane VMEM inside one grid step (input + interleaved rows + f32 matmul
    # result + stored block), double-buffered by the pipeline.  Keep each block
    # well under the smallest VMEM (v7x: 64 MiB).
    per_plane = (h * w + s * h * w + 3 * (s * h) * (s * w)) * max(int(itemsize), 4)
    budget = 8 * 1024 * 1024
    bn = max(1, min(n, budget // max(per_plane, 1)))
    while n % bn:                       # block must tile the plane axis exactly
        bn -= 1
    if bn == n and n % 2 == 0 and n >= 2:
        bn = n // 2                     # >=2 grid steps so the v7x megacore gets both TCs
    return bn


def resample(x, scale_factor=2):
    """F.interpolate(x, scale_factor, mode='bilinear', align_corners=False), NCHW."""
    # TODO(synk): non-integer scale_factor (allowed by F.interpolate) not implemented.
    s = int(scale_factor)
    assert s >= 1 and s == scale_factor
    b, c, h, w = x.shape
    n = b * c
    bn = _pick_block(n, h, w, s, jnp.dtype(x.dtype).itemsize)
    g = n // bn

    x3 = x.reshape(n, h, w)                         # free reshape: depthwise planes
    aw = jnp.asarray(_interp_matrix(w, s))          # constant (W, s*W) interp matrix

    out = pl.pallas_call(
        functools.partial(_resample_kernel, scale=s, phase_w=_phase_weights(s)),
        out_shape=jax.ShapeDtypeStruct((n, s * h, s * w), x.dtype),
        grid=(g,),
        in_specs=[
            pl.BlockSpec((bn, h, w), lambda i: (i, 0, 0)),
            pl.BlockSpec((w, s * w), lambda i: (0, 0)),
        ],
        out_specs=pl.BlockSpec((bn, s * h, s * w), lambda i: (i, 0, 0)),
        compiler_params=pltpu.CompilerParams(
            dimension_semantics=("parallel",)),
    )(x3, aw)
    return out.reshape(b, c, s * h, s * w)


# ---------------------------------------------------------------------------
# Pure-JAX reference (identical PyTorch align_corners=False gather formula)
# ---------------------------------------------------------------------------
def _resample_ref(x, s):
    _, _, h, w = x.shape

    def taps(size):
        dst = np.arange(size * s, dtype=np.float64)
        src = np.maximum((dst + 0.5) / s - 0.5, 0.0)
        i0 = np.floor(src).astype(np.int32)
        lam = (src - i0).astype(np.float32)
        i1 = np.minimum(i0 + 1, size - 1)
        return i0, i1, lam

    h0, h1, lh = taps(h)
    w0, w1, lw = taps(w)
    lh = lh[None, None, :, None]
    xh = x[:, :, h0, :] * (1.0 - lh) + x[:, :, h1, :] * lh
    out = xh[:, :, :, w0] * (1.0 - lw) + xh[:, :, :, w1] * lw
    return out


if __name__ == "__main__":
    key = jax.random.PRNGKey(0)
    x = jax.random.uniform(key, (2, 4, 16, 16), dtype=jnp.float32)

    fn = jax.jit(resample)          # scale_factor=2 (module default), static
    out = fn(x)
    jax.block_until_ready(out)

    assert out.shape == (2, 4, 32, 32)
    ref = _resample_ref(x, 2)
    # The MXU may evaluate the f32 matmul with bf16 passes -> allow ~1e-3 slack;
    # real indexing/interleave bugs would show O(0.1) errors.
    err = float(jnp.max(jnp.abs(out - ref)))
    assert err < 1e-2, f"max abs error vs reference: {err}"
    assert bool(jnp.all(jnp.isfinite(out)))
    print("KERNEL_OK")
</pallas_src>

<mosaic_0001>
module attributes {stable_mosaic.version = 11 : i64} {
  func.func @_resample_kernel(%arg0: i32, %arg1: memref<4x16x16xf32, #tpu.memory_space<vmem>>, %arg2: memref<16x32xf32, #tpu.memory_space<vmem>>, %arg3: memref<4x32x32xf32, #tpu.memory_space<vmem>>) attributes {dimension_semantics = [#tpu.dimension_semantics<parallel>], iteration_bounds = array<i64: 2>, scalar_prefetch = 0 : i64, scratch_operands = 0 : i64, tpu.core_type = #tpu.core_type<tc>, window_params = [{transform_indices = @transform_0, window_bounds = array<i64: 4, 16, 16>}, {pipeline_mode = #tpu.pipeline_mode<synchronous>, transform_indices = @transform_1, window_bounds = array<i64: 16, 32>}, {transform_indices = @transform_2, window_bounds = array<i64: 4, 32, 32>}]} {
    %c0 = arith.constant 0 : index
    %c0_0 = arith.constant 0 : index
    %c0_1 = arith.constant 0 : index
    %0 = vector.load %arg1[%c0, %c0_0, %c0_1] : memref<4x16x16xf32, #tpu.memory_space<vmem>>, vector<4x16x16xf32>
    %1 = vector.extract_strided_slice %0 {offsets = [0, 0, 0], sizes = [4, 1, 16], strides = [1, 1, 1]} : vector<4x16x16xf32> to vector<4x1x16xf32>
    %2 = vector.extract_strided_slice %0 {offsets = [0, 0, 0], sizes = [4, 15, 16], strides = [1, 1, 1]} : vector<4x16x16xf32> to vector<4x15x16xf32>
    %3 = tpu.concatenate %1, %2 in 1 : vector<4x1x16xf32>, vector<4x15x16xf32> -> vector<4x16x16xf32>
    %4 = vector.extract_strided_slice %0 {offsets = [0, 1, 0], sizes = [4, 15, 16], strides = [1, 1, 1]} : vector<4x16x16xf32> to vector<4x15x16xf32>
    %5 = vector.extract_strided_slice %0 {offsets = [0, 15, 0], sizes = [4, 1, 16], strides = [1, 1, 1]} : vector<4x16x16xf32> to vector<4x1x16xf32>
    %6 = tpu.concatenate %4, %5 in 1 : vector<4x15x16xf32>, vector<4x1x16xf32> -> vector<4x16x16xf32>
    %cst = arith.constant 2.500000e-01 : f32
    %7 = vector.broadcast %cst : f32 to vector<4x16x16xf32>
    %8 = arith.mulf %7, %3 : vector<4x16x16xf32>
    %cst_2 = arith.constant 7.500000e-01 : f32
    %9 = vector.broadcast %cst_2 : f32 to vector<4x16x16xf32>
    %10 = arith.mulf %9, %0 : vector<4x16x16xf32>
    %11 = arith.addf %8, %10 : vector<4x16x16xf32>
    %cst_3 = arith.constant 7.500000e-01 : f32
    %12 = vector.broadcast %cst_3 : f32 to vector<4x16x16xf32>
    %13 = arith.mulf %12, %0 : vector<4x16x16xf32>
    %cst_4 = arith.constant 2.500000e-01 : f32
    %14 = vector.broadcast %cst_4 : f32 to vector<4x16x16xf32>
    %15 = arith.mulf %14, %6 : vector<4x16x16xf32>
    %16 = arith.addf %13, %15 : vector<4x16x16xf32>
    %17 = vector.shape_cast %11 : vector<4x16x16xf32> to vector<4x16x1x16xf32>
    %18 = vector.shape_cast %16 : vector<4x16x16xf32> to vector<4x16x1x16xf32>
    %19 = tpu.concatenate %17, %18 in 2 : vector<4x16x1x16xf32>, vector<4x16x1x16xf32> -> vector<4x16x2x16xf32>
    %20 = vector.shape_cast %19 : vector<4x16x2x16xf32> to vector<4x32x16xf32>
    %21 = vector.shape_cast %20 : vector<4x32x16xf32> to vector<128x16xf32>
    %c0_5 = arith.constant 0 : index
    %c0_6 = arith.constant 0 : index
    %22 = vector.load %arg2[%c0_5, %c0_6] : memref<16x32xf32, #tpu.memory_space<vmem>>, vector<16x32xf32>
    %cst_7 = arith.constant dense<0.000000e+00> : vector<128x32xf32>
    %23 = tpu.matmul %21, %22, %cst_7 {dimension_numbers = #tpu.dot_dimension_numbers<[1], [0], [0], [1], [0, 0, 1, 1], [], []>} : vector<128x16xf32>, vector<16x32xf32>, vector<128x32xf32> -> vector<128x32xf32>
    %24 = vector.shape_cast %23 : vector<128x32xf32> to vector<4x32x32xf32>
    %c0_8 = arith.constant 0 : index
    %c0_9 = arith.constant 0 : index
    %c0_10 = arith.constant 0 : index
    %25 = vector.load %arg3[%c0_8, %c0_9, %c0_10] : memref<4x32x32xf32, #tpu.memory_space<vmem>>, vector<4x32x32xf32>
    tpu.vector_store %arg3[%c0_8, %c0_9, %c0_10], %24 {strides = array<i32>} : memref<4x32x32xf32, #tpu.memory_space<vmem>>, vector<4x32x32xf32>,
    return
  }
  func.func @transform_0(%arg0: i32) -> (i32, i32, i32) {
    %c0_i32 = arith.constant 0 : i32
    %c0_i32_0 = arith.constant 0 : i32
    %c0_i32_1 = arith.constant 0 : i32
    return %arg0, %c0_i32, %c0_i32_0 : i32, i32, i32
  }
  func.func @transform_1(%arg0: i32) -> (i32, i32) {
    %c0_i32 = arith.constant 0 : i32
    %c0_i32_0 = arith.constant 0 : i32
    %c0_i32_1 = arith.constant 0 : i32
    return %c0_i32, %c0_i32_0 : i32, i32
  }
  func.func @transform_2(%arg0: i32) -> (i32, i32, i32) {
    %c0_i32 = arith.constant 0 : i32
    %c0_i32_0 = arith.constant 0 : i32
    %c0_i32_1 = arith.constant 0 : i32
    return %arg0, %c0_i32, %c0_i32_0 : i32, i32, i32
  }
}

</mosaic_0001>

<bundles_post_ra>
// kernel: resample.1
= control target key start
LH: loop header
LB: loop body
LE: loop exit
PB: predicated region body
PF: predicated region fallthrough
CT: control target
= control target key end

     0   :  { %7 = vsyncpa [#allocation3], 0  ;;  %s1789_s0 = inlined_call_operand.hbm [shape: f32[8,16,16], index: 0, kind: input, shape index: {}]   ;;  %s1790_s1 = inlined_call_operand.hbm [shape: f32[16,32], index: 1, kind: input, shape index: {}]   ;;  %s1791_s2 = inlined_call_operand.hbm [shape: f32[8,32,32], index: 2, kind: output, shape index: {}]  }
   0x1   :  { %9 = vsyncpa [#allocation3 + $0x1], 0 }
   0x2   :  { %10 = vsyncpa [#allocation6], 0 }
   0x3   :  { %11 = vsyncpa [#allocation4], 0 }
   0x4   :  { %13 = vsyncpa [#allocation4 + $0x1], 0  ;;  %s1291_s9 = smov 0   ;;  %s1293_s10 = smov 0  }
   0x5   :  { %s1295_s11 = smov 0   ;;  %s1297_s12 = smov 0  }
   0x6 LB: > { %s1312_s13 = sadd.s32 4294967295, %s1269_s12   ;;  %s1034_s14 = sadd.s32 4294967294, %s1269_s12   ;;  %s1269_s12 = sphi %s1297_s12, %s1801_s12   ;;  %s1265_s11 = sphi %s1295_s11, %s1800_s11   ;;  %s1261_s10 = sphi %s1293_s10, %s1799_s10   ;;  %s1257_s9 = sphi %s1291_s9, %s1798_s9  }
   0x7   : > { %p39_p0 = scmp.ne.s32.totalorder %s1261_s10, %s1257_s9  ;;  %p40_p1 = scmp.eq.s32.totalorder %s1312_s13, 0 }
   0x8   : > { %p84_p2 = scmp.eq.s32.totalorder %s1312_s13, 1  ;;  %p90_p3 = scmp.eq.s32.totalorder %s1034_s14, 1 }
   0x9   : > { %p1321_p4 = por %p40_p1, %p39_p0  ;;  %p1035_p5 = scmp.ge.s32.totalorder %s1269_s12, 1 }
   0xa   : > { %p1326_p6 = por %p90_p3, %p39_p0  ;;  %p97_p7 = scmp.lt.s32.totalorder %s1269_s12, 3 }
   0xb   : > { %s108_s19 = sshll.u32 %s1790_s1, 4  ;;  %s1271_s21 = smov [#allocation5]   ;;  %s109_s19 = int_to_ptr.hbm [resolvable:$true] %s108_s19 }
   0xc   : > { %p1334_p8 = pnand %p1035_p5, %p97_p7  ;;  %s110_s22 = sshll.u32 %s1271_s21, 4  ;;  %s111_s22 = int_to_ptr.vmem [resolvable:$true] %s110_s22 }
   0xd   : > { %s1344_s23 = sadd.s32 1, %s1269_s12   ;;  %s1272_s24 = smov 128  }
   0xe   : > { %p1086_p9 = pneg %p1334_p8  ;;  %s1273_s25 = smov 8  }
   0xf   : > { %s23_s26 = ssub.s32 %s1269_s12, %s1344_s23  ;;  %s26_s27 = sadd.s32 1, %s1265_s11 }
  0x10   : > { %p1087_p10 = pnand %p1086_p9, %p40_p1  ;;  %p24_p12 = scmp.eq.s32.totalorder %s23_s26, 0 }
  0x11   : > { %p33_p13 = scmp.ne.s32.totalorder %s1265_s11, %s1261_s10  ;;  %p34_p0 = scmp.eq.s32.totalorder %s1269_s12, 0 }
  0x12   : > { %1089 = dma.hbm_to_vmem [thread:$0]  (!%p1087_p10), %s109_s19, 256, %s111_s22, [#allocation6], %s1272_s24, %s1272_s24, %s1273_s25  }
  0x13   : > { %s1356_s28 = scalar_select %p24_p12, %s1265_s11, %s26_s27  }
  0x14   : > { %p1360_p3 = por %p84_p2, %p33_p13  ;;  %p1099_p5 = scmp.lt.s32.totalorder %s1269_s12, 2 }
  0x15   : > { %s124_s30 = sand.u32 1, %s1265_s11   ;;  %s1069_s3 = sshll.u32 %s1269_s12, 6 }
  0x16   : > { %p35_p7 = por %p34_p0, %p33_p13  ;;  %s1038_s4 = sshll.u32 %s124_s30, 6 }
  0x17   : > { %s134_s7 = scalar_lea.hbm %s1789_s0, %s1069_s3  ;;  %s128_s14 = scalar_lea.vmem [#allocation2], %s1038_s4 }
  0x18   : > { %s135_s8 = sshll.u32 %s134_s7, 4  ;;  %s137_s17 = sshll.u32 %s128_s14, 4  ;;  %s136_s8 = int_to_ptr.hbm [resolvable:$true] %s135_s8  ;;  %s138_s17 = int_to_ptr.vmem [resolvable:$true] %s137_s17 }
  0x19   : > { %p1370_p9 = pnand %p1099_p5, %p35_p7  ;;  %s125_s19 = scalar_lea.sflag [#allocation3], %s124_s30 }
  0x1a   : > { %s1169_s21 = sshra.s32 %s136_s8, 4  ;;  %s1176_s3 = scalar_lea.hbm %s1789_s0, 128  ;;  %s1170_s21 = int_to_ptr.hbm [resolvable:$true] %s1169_s21 }
  0x1b   : > { %s1171_s22 = scalar_lea.hbm %s1170_s21, 64  ;;  %p1173_p10 = pneg %p1370_p9 }
  0x1c   : > { %p1172_p2 = scmp.ne.s32.totalorder %s1170_s21, %s1171_s22  ;;  %p1177_p0 = scmp.lt.s32.totalorder %s1170_s21, %s1789_s0 }
  0x1d   : > { %p1178_p5 = scmp.lt.s32.totalorder %s1176_s3, %s1171_s22 }
  0x1e   : > { %p1174_p12 = pnand %p1173_p10, %p1172_p2 }
  0x1f   : > { %p1179_p7 = por %p1178_p5, %p1177_p0 }
  0x20   : > { %p1175_p13 = pneg %p1174_p12 }
  0x22   : > { %p1180_p11 = pnand %p1179_p7, %p1175_p13 }
  0x24   : > { %1183 = shalt.err (!%p1180_p11)
}
  0x25   : > { %1093 = dma.hbm_to_vmem [thread:$0]  (!%p1370_p9), %s136_s8, 1024, %s138_s17, %s125_s19, %s1272_s24, %s1272_s24, %s1273_s25  }
  0x26   : > { %149 = sbr.rel (%p1334_p8) target bundleno = 303 (0x12f), region = 28  ;;  %s1390_s30 = sand.u32 (!%p1334_p8), 1, %s1261_s10  }
  0x27   : > { %s1043_s6 = sshll.u32 (!%p1334_p8), %s1390_s30, 6  ;;  %s152_s7 = scalar_lea.sflag (!%p1334_p8), [#allocation3], %s1390_s30 }
  0x28   : > { %s1394_s14 = scalar_lea.vmem (!%p1334_p8), [#allocation2], %s1043_s6 }
  0x2b   : > { %1244 = dma.done.wait (%p1321_p4), %s152_s7, 1024  }
  0x2c   : > { %1246 = vsyncadd (%p1321_p4), %s152_s7, 4294966272 }
  0x2d   : > { %1248 = dma.done.wait (%p40_p1), [#allocation6], 256  }
  0x2e   : > { %1250 = vsyncadd (%p40_p1), [#allocation6], 4294967040  ;;  %v667_v0 = vld [vmem:[#allocation5 + $0x8] sm:$0xff]  ;;  %v666_v1 = vld [vmem:[#allocation5] sm:$0xff]  ;;  %vm225_vm0 = vcmask 1046528   ;;  %vm200_vm1 = vcmask 1040384  }
  0x2f   : > { %v184_v2 = vld [vmem:[%s1394_s14] sm:$0xff]  ;;  %1073 = vmatpush.msra.mxu2 %v667_v0  ;;  %1074 = vmatpush.msra.mxu3 %v667_v0  ;;  %v185_v3 = vld [vmem:[%s1394_s14 + $0x8] sm:$0xff]  ;;  %v1417_v21 = vld [vmem:[%s1394_s14 + $0x10] sm:$0xff]  ;;  %vm819_vm2 = vcmask 130048   ;;  %s1045_s15 = sshll.u32 %s1390_s30, 7  ;;  %vm917_vm3 = vcmask 261120  }
  0x30   : > { %v226_v4 = vrot.slane %v184_v2, 1  ;;  %v227_v5 = vrot.slane %v185_v3, 1  ;;  %866 = vmatpush.msra.mxu0 %v667_v0  ;;  %1072 = vmatpush.msra.mxu1 %v667_v0  ;;  %v201_v6 = vrot.slane %v184_v2, 7  ;;  %v258_v9 = vmul.f32 0.75, %v184_v2  ;;  %v1420_v22 = vld [vmem:[%s1394_s14 + $0x18] sm:$0xff]  ;;  %s1721_s20 = scalar_lea.vmem [#allocation7], %s1045_s15 }
  0x31   : > { %1076 = vmatpush.msra.mxu2 %v666_v1  ;;  %1077 = vmatpush.msra.mxu3 %v666_v1  ;;  %v202_v13 = vrot.slane %v185_v3, 7  ;;  %v259_v19 = vmul.f32 0.75, %v185_v3  ;;  %v229_v31 = vrot.slane %v1417_v21, 1  ;;  %v230_v32 = vrot.slane %v1420_v22, 1  ;;  %s1071_s24 = sshll.u32 %s1312_s13, 7  ;;  %s948_s18 = sshll.u32 %s1721_s20, 4  ;;  %s949_s18 = int_to_ptr.vmem [resolvable:$true] %s948_s18 }
  0x32   : > { %867 = vmatpush.msra.mxu0 %v666_v1  ;;  %1075 = vmatpush.msra.mxu1 %v666_v1  ;;  %v228_v7 = vsel %vm225_vm0, %v226_v4, %v227_v5  ;;  %v221_v8 = vsel %vm200_vm1, %v184_v2, %v201_v6  ;;  %v246_v14 = vsel %vm225_vm0, %v227_v5, %v185_v3  ;;  %v204_v39 = vrot.slane %v1417_v21, 7  ;;  %s947_s17 = scalar_lea.hbm %s1791_s2, %s1071_s24  ;;  %s935_s21 = scalar_lea.sflag [#allocation4], %s1390_s30 }
  0x33   : > { %v274_v10 = vmul.f32 0.25, %v228_v7  ;;  %v250_v11 = vmul.f32 0.25, %v221_v8  ;;  %v275_v20 = vmul.f32 0.25, %v246_v14  ;;  %v203_v23 = vsel %vm200_vm1, %v201_v6, %v202_v13  ;;  %s950_s19 = sshll.u32 %s947_s17, 4  ;;  %s1219_s3 = scalar_lea.hbm %s1791_s2, 256  ;;  %s951_s19 = int_to_ptr.hbm [resolvable:$true] %s950_s19 }
  0x34   : > { %v251_v33 = vmul.f32 0.25, %v203_v23  ;;  %v231_v40 = vsel %vm225_vm0, %v229_v31, %v230_v32  ;;  %v260_v45 = vmul.f32 0.75, %v1417_v21  ;;  %v222_v48 = vsel %vm200_vm1, %v1417_v21, %v204_v39  ;;  %s1213_s22 = sshra.s32 %s951_s19, 4  ;;  %s1214_s22 = int_to_ptr.hbm [resolvable:$true] %s1213_s22 }
  0x35   : > { %v1408_v12 = vadd.f32 %v274_v10, %v258_v9  ;;  %v1411_v15 = vadd.f32 %v258_v9, %v250_v11  ;;  %v1429_v34 = vadd.f32 %v275_v20, %v259_v19  ;;  %v276_v46 = vmul.f32 0.25, %v231_v40  ;;  %v1479_v20 = vld [vmem:[%s1394_s14 + $0x20] sm:$0xff]  ;;  %s1215_s26 = scalar_lea.hbm %s1214_s22, 128  ;;  %p1220_p11 = scmp.lt.s32.totalorder %s1214_s22, %s1791_s2 }
  0x36   : > { %v1438_v41 = vadd.f32 %v259_v19, %v251_v33  ;;  %v252_v58 = vmul.f32 0.25, %v222_v48  ;;  %v205_v62 = vrot.slane %v1420_v22, 7  ;;  %v247_v6 = vsel %vm225_vm0, %v230_v32, %v1420_v22  ;;  %p1216_p1 = scmp.ne.s32.totalorder %s1214_s22, %s1215_s26  ;;  %p1221_p9 = scmp.lt.s32.totalorder %s1219_s3, %s1215_s26 }
  0x37   : > { %v418_v16 = vrot.slane %v1408_v12, 1  ;;  %v419_v17 = vrot.slane %v1408_v12, 2  ;;  %v420_v18 = vrot.slane %v1408_v12, 3  ;;  %v298_v24 = vrot.slane %v1411_v15, 1 }
  0x38   : > { %v299_v25 = vrot.slane %v1411_v15, 2  ;;  %v474_v26 = vperm.slane %v1408_v12, 0  ;;  %v300_v29 = vrot.slane %v1411_v15, 3  ;;  %v425_v42 = vrot.slane %v1429_v34, 1  ;;  %p1217_p4 = pnand %p1216_p1, %p1360_p3  ;;  %p1222_p2 = por %p1221_p9, %p1220_p11 }
  0x39   : > { %v475_v27 = vperm.slane %v418_v16, 0  ;;  %v476_v28 = vperm.slane %v419_v17, 0  ;;  %v477_v30 = vperm.slane %v420_v18, 0  ;;  %v426_v43 = vrot.slane %v1429_v34, 2 }
  0x3a   : > { %v602_v35 = vsel %vm200_vm1, %v1411_v15, %v474_v26  ;;  %v427_v44 = vrot.slane %v1429_v34, 3  ;;  %v482_v47 = vperm.slane %v1429_v34, 0  ;;  %v305_v49 = vrot.slane %v1438_v41, 1  ;;  %p1218_p8 = pneg %p1217_p4 }
  0x3b   : > { %v603_v36 = vsel %vm200_vm1, %v298_v24, %v475_v27  ;;  %v604_v37 = vsel %vm200_vm1, %v299_v25, %v476_v28  ;;  %v605_v38 = vsel %vm200_vm1, %v300_v29, %v477_v30  ;;  %732 = vst [vmem:[#allocation1] ss:$4 sm:$0xff] %v602_v35  ;;  %v483_v50 = vperm.slane %v425_v42, 0  ;;  %v1485_v25 = vld [vmem:[%s1394_s14 + $0x28] sm:$0xff] }
  0x3c   : > { %734 = vst [vmem:[#allocation1 + $0x1] ss:$4 sm:$0xff] %v603_v36  ;;  %v306_v51 = vrot.slane %v1438_v41, 2  ;;  %v484_v52 = vperm.slane %v426_v43, 0  ;;  %v421_v53 = vrot.slane %v1408_v12, 4  ;;  %v422_v54 = vrot.slane %v1408_v12, 5  ;;  %p1223_p10 = pnand %p1222_p2, %p1218_p8 }
  0x3d   : > { %736 = vst [vmem:[#allocation1 + $0x2] ss:$4 sm:$0xff] %v604_v37  ;;  %v307_v55 = vrot.slane %v1438_v41, 3  ;;  %v485_v56 = vperm.slane %v427_v44, 0  ;;  %v423_v57 = vrot.slane %v1408_v12, 6  ;;  %v1453_v59 = vadd.f32 %v276_v46, %v260_v45 }
  0x3e   : > { %738 = vst [vmem:[#allocation1 + $0x3] ss:$4 sm:$0xff] %v605_v38  ;;  %v610_v60 = vsel %vm200_vm1, %v1438_v41, %v482_v47  ;;  %v424_v61 = vrot.slane %v1408_v12, 7  ;;  %v611_v63 = vsel %vm200_vm1, %v305_v49, %v483_v50  ;;  %v301_v0 = vrot.slane %v1411_v15, 4 }
  0x3f   : > { %v612_v1 = vsel %vm200_vm1, %v306_v51, %v484_v52  ;;  %v302_v3 = vrot.slane %v1411_v15, 5  ;;  %v478_v4 = vperm.slane %v421_v53, 0  ;;  %v479_v5 = vperm.slane %v422_v54, 0 }
  0x40   : > { %v613_v7 = vsel %vm200_vm1, %v307_v55, %v485_v56  ;;  %v303_v8 = vrot.slane %v1411_v15, 6  ;;  %v480_v9 = vperm.slane %v423_v57, 0  ;;  %v1469_v10 = vadd.f32 %v260_v45, %v252_v58 }
  0x41   : > { %v432_v11 = vrot.slane %v1453_v59, 1  ;;  %v304_v12 = vrot.slane %v1411_v15, 7  ;;  %v481_v13 = vperm.slane %v424_v61, 0  ;;  %v433_v14 = vrot.slane %v1453_v59, 2 }
  0x42   : > { %v206_v16 = vsel %vm200_vm1, %v204_v39, %v205_v62  ;;  %v434_v17 = vrot.slane %v1453_v59, 3  ;;  %v606_v18 = vsel %vm200_vm1, %v301_v0, %v478_v4  ;;  %v607_v19 = vsel %vm200_vm1, %v302_v3, %v479_v5 }
  0x43   : > { %v261_v21 = vmul.f32 0.75, %v1420_v22  ;;  %v277_v23 = vmul.f32 0.25, %v247_v6  ;;  %v490_v15 = vperm.slane %v1453_v59, 0  ;;  %v608_v24 = vsel %vm200_vm1, %v303_v8, %v480_v9  ;;  %740 = vst [vmem:[#allocation1 + $0x20] ss:$4 sm:$0xff] %v606_v18 }
  0x44   : > { %v312_v26 = vrot.slane %v1469_v10, 1  ;;  %v491_v27 = vperm.slane %v432_v11, 0  ;;  %v428_v28 = vrot.slane %v1429_v34, 4  ;;  %v609_v29 = vsel %vm200_vm1, %v304_v12, %v481_v13  ;;  %742 = vst [vmem:[#allocation1 + $0x21] ss:$4 sm:$0xff] %v607_v19 }
  0x45   : > { %v1462_v2 = vld.sshfl [vmem:[#allocation1] sm:$0xff pattern:$0x73625140]  ;;  %v313_v30 = vrot.slane %v1469_v10, 2  ;;  %v492_v31 = vperm.slane %v433_v14, 0  ;;  %v429_v22 = vrot.slane %v1429_v34, 5  ;;  %v1496_v39 = vadd.f32 %v277_v23, %v261_v21 }
  0x46   : > { %749 = vst [vmem:[#allocation1] ss:$4 sm:$0xff] %v610_v60  ;;  %v232_v32 = vrot.slane %v1479_v20, 1  ;;  %v314_v33 = vrot.slane %v1469_v10, 3  ;;  %v493_v35 = vperm.slane %v434_v17, 0  ;;  %v430_v36 = vrot.slane %v1429_v34, 6  ;;  %1046 = vmatmul.msk.f32.vlgmr.msra.gmra.mxu0 %vm819_vm2, %v1462_v2 }
  0x47   : > { %750 = vst [vmem:[#allocation1 + $0x1] ss:$4 sm:$0xff] %v611_v63  ;;  %v233_v37 = vrot.slane %v1485_v25, 1  ;;  %v253_v38 = vmul.f32 0.25, %v206_v16  ;;  %v618_v40 = vsel %vm200_vm1, %v1469_v10, %v490_v15  ;;  %v619_v42 = vsel %vm200_vm1, %v312_v26, %v491_v27 }
  0x48   : > { %751 = vst [vmem:[#allocation1 + $0x2] ss:$4 sm:$0xff] %v612_v1  ;;  %v308_v43 = vrot.slane %v1438_v41, 4  ;;  %v486_v44 = vperm.slane %v428_v28, 0  ;;  %v207_v45 = vrot.slane %v1479_v20, 7  ;;  %v620_v46 = vsel %vm200_vm1, %v313_v30, %v492_v31 }
  0x49   : > { %752 = vst [vmem:[#allocation1 + $0x3] ss:$4 sm:$0xff] %v613_v7  ;;  %v309_v48 = vrot.slane %v1438_v41, 5  ;;  %v487_v49 = vperm.slane %v429_v22, 0  ;;  %v621_v50 = vsel %vm200_vm1, %v314_v33, %v493_v35  ;;  %v310_v51 = vrot.slane %v1438_v41, 6  ;;  %v1553_v33 = vld [vmem:[%s1394_s14 + $0x30] sm:$0xff] }
  0x4a   : > { %744 = vst [vmem:[#allocation1 + $0x22] ss:$4 sm:$0xff] %v608_v24  ;;  %v488_v52 = vperm.slane %v430_v36, 0  ;;  %v234_v53 = vsel %vm225_vm0, %v232_v32, %v233_v37  ;;  %v1510_v54 = vadd.f32 %v261_v21, %v253_v38  ;;  %v439_v55 = vrot.slane %v1496_v39, 1  ;;  %v1556_v35 = vld [vmem:[%s1394_s14 + $0x38] sm:$0xff] }
  0x4b   : > { %746 = vst [vmem:[#allocation1 + $0x23] ss:$4 sm:$0xff] %v609_v29  ;;  %v440_v56 = vrot.slane %v1496_v39, 2  ;;  %v614_v57 = vsel %vm200_vm1, %v308_v43, %v486_v44  ;;  %v223_v58 = vsel %vm200_vm1, %v1479_v20, %v207_v45  ;;  %v441_v60 = vrot.slane %v1496_v39, 3 }
  0x4c   : > { %v615_v61 = vsel %vm200_vm1, %v309_v48, %v487_v49  ;;  %v262_v62 = vmul.f32 0.75, %v1479_v20  ;;  %v278_v63 = vmul.f32 0.25, %v234_v53  ;;  %v498_v0 = vperm.slane %v1496_v39, 0 }
  0x4d   : > { %v616_v1 = vsel %vm200_vm1, %v310_v51, %v488_v52  ;;  %v319_v3 = vrot.slane %v1510_v54, 1  ;;  %v499_v4 = vperm.slane %v439_v55, 0  ;;  %v254_v5 = vmul.f32 0.25, %v223_v58 }
  0x4e   : > { %v320_v6 = vrot.slane %v1510_v54, 2  ;;  %v500_v7 = vperm.slane %v440_v56, 0  ;;  %v321_v8 = vrot.slane %v1510_v54, 3  ;;  %v501_v9 = vperm.slane %v441_v60, 0 }
  0x4f   : > { %v1527_v11 = vadd.f32 %v278_v63, %v262_v62  ;;  %v626_v12 = vsel %vm200_vm1, %v1510_v54, %v498_v0  ;;  %v431_v13 = vrot.slane %v1429_v34, 7  ;;  %v627_v14 = vsel %vm200_vm1, %v319_v3, %v499_v4 }
  0x50   : > { %v1504_v47 = vld.sshfl [vmem:[#allocation1] sm:$0xff pattern:$0x73625140]  ;;  %v1534_v16 = vadd.f32 %v262_v62, %v254_v5  ;;  %v628_v17 = vsel %vm200_vm1, %v320_v6, %v500_v7  ;;  %v629_v19 = vsel %vm200_vm1, %v321_v8, %v501_v9  ;;  %v208_v20 = vrot.slane %v1485_v25, 7 }
  0x51   : > { %759 = vst [vmem:[#allocation1] ss:$4 sm:$0xff] %v618_v40  ;;  %v446_v21 = vrot.slane %v1527_v11, 1  ;;  %v248_v34 = vsel %vm225_vm0, %v233_v37, %v1485_v25  ;;  %v311_v23 = vrot.slane %v1438_v41, 7  ;;  %v489_v15 = vperm.slane %v431_v13, 0 }
  0x52   : > { %760 = vst [vmem:[#allocation1 + $0x1] ss:$4 sm:$0xff] %v619_v42  ;;  %v748_v2 = vld.sshfl [vmem:[#allocation1 + $0x20] sm:$0xff pattern:$0x73625140]  ;;  %v447_v24 = vrot.slane %v1527_v11, 2  ;;  %v209_v29 = vsel %vm200_vm1, %v207_v45, %v208_v20 }
  0x53   : > { %761 = vst [vmem:[#allocation1 + $0x2] ss:$4 sm:$0xff] %v620_v46  ;;  %1047 = vmatmul.msk.f32.gmra.mxu0 %vm819_vm2, %v748_v2  ;;  %v448_v26 = vrot.slane %v1527_v11, 3  ;;  %v326_v27 = vrot.slane %v1534_v16, 1  ;;  %v506_v28 = vperm.slane %v1527_v11, 0  ;;  %v263_v30 = vmul.f32 0.75, %v1485_v25 }
  0x54   : > { %762 = vst [vmem:[#allocation1 + $0x3] ss:$4 sm:$0xff] %v621_v50  ;;  %v279_v31 = vmul.f32 0.25, %v248_v34  ;;  %v435_v22 = vrot.slane %v1453_v59, 4  ;;  %v327_v41 = vrot.slane %v1534_v16, 2  ;;  %v507_v32 = vperm.slane %v446_v21, 0 }
  0x55   : > { %753 = vst [vmem:[#allocation1 + $0x20] ss:$4 sm:$0xff] %v614_v57  ;;  %v436_v36 = vrot.slane %v1453_v59, 5  ;;  %v617_v37 = vsel %vm200_vm1, %v311_v23, %v489_v15  ;;  %v328_v38 = vrot.slane %v1534_v16, 3  ;;  %v508_v40 = vperm.slane %v447_v24, 0 }
  0x56   : > { %754 = vst [vmem:[#allocation1 + $0x21] ss:$4 sm:$0xff] %v615_v61  ;;  %v509_v42 = vperm.slane %v448_v26, 0  ;;  %v437_v25 = vrot.slane %v1453_v59, 6  ;;  %v634_v43 = vsel %vm200_vm1, %v1534_v16, %v506_v28  ;;  %v255_v44 = vmul.f32 0.25, %v209_v29 }
  0x57   : > { %755 = vst [vmem:[#allocation1 + $0x22] ss:$4 sm:$0xff] %v616_v1  ;;  %v315_v45 = vrot.slane %v1469_v10, 4  ;;  %v438_v46 = vrot.slane %v1453_v59, 7  ;;  %v235_v48 = vrot.slane %v1553_v33, 1  ;;  %v236_v49 = vrot.slane %v1556_v35, 1 }
  0x58   : > { %756 = vst [vmem:[#allocation1 + $0x23] ss:$4 sm:$0xff] %v617_v37  ;;  %v1570_v50 = vadd.f32 %v279_v31, %v263_v30  ;;  %v494_v51 = vperm.slane %v435_v22, 0  ;;  %v635_v52 = vsel %vm200_vm1, %v326_v27, %v507_v32  ;;  %v316_v53 = vrot.slane %v1469_v10, 5 }
  0x59   : > { %v495_v55 = vperm.slane %v436_v36, 0  ;;  %v636_v56 = vsel %vm200_vm1, %v327_v41, %v508_v40  ;;  %v317_v59 = vrot.slane %v1469_v10, 6  ;;  %v496_v58 = vperm.slane %v437_v25, 0 }
  0x5a   : > { %v1579_v60 = vadd.f32 %v263_v30, %v255_v44  ;;  %v318_v61 = vrot.slane %v1469_v10, 7  ;;  %v497_v62 = vperm.slane %v438_v46, 0  ;;  %v210_v63 = vrot.slane %v1553_v33, 7 }
  0x5b   : > { %v767_v18 = vld.sshfl [vmem:[#allocation1] sm:$0xff pattern:$0x73625140]  ;;  %1048 = vmatmul.msk.f32.gmra.mxu0 %vm819_vm2, %v1504_v47  ;;  %v637_v47 = vsel %vm200_vm1, %v328_v38, %v509_v42  ;;  %v237_v0 = vsel %vm225_vm0, %v235_v48, %v236_v49  ;;  %v453_v1 = vrot.slane %v1570_v50, 1  ;;  %v622_v2 = vsel %vm200_vm1, %v315_v45, %v494_v51 }
  0x5c   : > { %769 = vst [vmem:[#allocation1] ss:$4 sm:$0xff] %v626_v12  ;;  %1050 = vmatmul.msk.f32.vlgmr.msra.gmra.mxu1 %vm819_vm2, %v767_v18  ;;  %v454_v3 = vrot.slane %v1570_v50, 2  ;;  %v623_v4 = vsel %vm200_vm1, %v316_v53, %v495_v55  ;;  %v455_v6 = vrot.slane %v1570_v50, 3  ;;  %v442_v10 = vrot.slane %v1496_v39, 4 }
  0x5d   : > { %770 = vst [vmem:[#allocation1 + $0x1] ss:$4 sm:$0xff] %v627_v14  ;;  %v624_v7 = vsel %vm200_vm1, %v317_v59, %v496_v58  ;;  %v264_v8 = vmul.f32 0.75, %v1553_v33  ;;  %v280_v9 = vmul.f32 0.25, %v237_v0  ;;  %v514_v12 = vperm.slane %v1570_v50, 0 }
  0x5e   : > { %771 = vst [vmem:[#allocation1 + $0x2] ss:$4 sm:$0xff] %v628_v17  ;;  %v625_v13 = vsel %vm200_vm1, %v318_v61, %v497_v62  ;;  %v224_v14 = vsel %vm200_vm1, %v1553_v33, %v210_v63  ;;  %v333_v17 = vrot.slane %v1579_v60, 1  ;;  %v515_v18 = vperm.slane %v453_v1, 0 }
  0x5f   : > { %772 = vst [vmem:[#allocation1 + $0x3] ss:$4 sm:$0xff] %v629_v19  ;;  %v758_v5 = vld.sshfl [vmem:[#allocation1 + $0x20] sm:$0xff pattern:$0x73625140]  ;;  %v443_v19 = vrot.slane %v1496_v39, 5  ;;  %v1606_v28 = vadd.f32 %v280_v9, %v264_v8  ;;  %v642_v29 = vsel %vm200_vm1, %v1579_v60, %v514_v12  ;;  %v249_v36 = vsel %vm225_vm0, %v236_v49, %v1556_v35 }
  0x60   : > { %763 = vst [vmem:[#allocation1 + $0x20] ss:$4 sm:$0xff] %v622_v2  ;;  %v334_v20 = vrot.slane %v1579_v60, 2  ;;  %v516_v21 = vperm.slane %v454_v3, 0  ;;  %v444_v34 = vrot.slane %v1496_v39, 6  ;;  %v335_v23 = vrot.slane %v1579_v60, 3 }
  0x61   : > { %764 = vst [vmem:[#allocation1 + $0x21] ss:$4 sm:$0xff] %v623_v4  ;;  %v517_v15 = vperm.slane %v455_v6, 0  ;;  %v322_v24 = vrot.slane %v1510_v54, 4  ;;  %v445_v26 = vrot.slane %v1496_v39, 7  ;;  %v256_v27 = vmul.f32 0.25, %v224_v14 }
  0x62   : > { %765 = vst [vmem:[#allocation1 + $0x22] ss:$4 sm:$0xff] %v624_v7  ;;  %v502_v30 = vperm.slane %v442_v10, 0  ;;  %v643_v31 = vsel %vm200_vm1, %v333_v17, %v515_v18  ;;  %v323_v22 = vrot.slane %v1510_v54, 5  ;;  %v503_v41 = vperm.slane %v443_v19, 0 }
  0x63   : > { %1049 = vmatmul.msk.f32.gmra.mxu0 %vm819_vm2, %v758_v5  ;;  %766 = vst [vmem:[#allocation1 + $0x23] ss:$4 sm:$0xff] %v625_v13  ;;  %v644_v37 = vsel %vm200_vm1, %v334_v20, %v516_v21  ;;  %v324_v39 = vrot.slane %v1510_v54, 6  ;;  %v504_v38 = vperm.slane %v444_v34, 0  ;;  %v211_v40 = vrot.slane %v1556_v35, 7 }
  0x64   : > { %v645_v42 = vsel %vm200_vm1, %v335_v23, %v517_v15  ;;  %v325_v25 = vrot.slane %v1510_v54, 7  ;;  %v1620_v44 = vadd.f32 %v264_v8, %v256_v27  ;;  %v460_v45 = vrot.slane %v1606_v28, 1 }
  0x65   : > { %v630_v46 = vsel %vm200_vm1, %v322_v24, %v502_v30  ;;  %v265_v48 = vmul.f32 0.75, %v1556_v35  ;;  %v281_v49 = vmul.f32 0.25, %v249_v36  ;;  %v461_v51 = vrot.slane %v1606_v28, 2 }
  0x66   : > { %v1575_v57 = vld.sshfl [vmem:[#allocation1] sm:$0xff pattern:$0x73625140]  ;;  %v462_v53 = vrot.slane %v1606_v28, 3  ;;  %v632_v54 = vsel %vm200_vm1, %v324_v39, %v504_v38  ;;  %v522_v59 = vperm.slane %v1606_v28, 0  ;;  %v449_v35 = vrot.slane %v1527_v11, 4 }
  0x67   : > { %779 = vst [vmem:[#allocation1] ss:$4 sm:$0xff] %v634_v43  ;;  %v505_v43 = vperm.slane %v445_v26, 0  ;;  %v523_v61 = vperm.slane %v460_v45, 0  ;;  %v450_v62 = vrot.slane %v1527_v11, 5  ;;  %v341_v0 = vrot.slane %v1620_v44, 2 }
  0x68   : > { %780 = vst [vmem:[#allocation1 + $0x1] ss:$4 sm:$0xff] %v635_v52  ;;  %v631_v52 = vsel %vm200_vm1, %v323_v22, %v503_v41  ;;  %v524_v33 = vperm.slane %v461_v51, 0  ;;  %v342_v2 = vrot.slane %v1620_v44, 3  ;;  %v525_v3 = vperm.slane %v462_v53, 0 }
  0x69   : > { %781 = vst [vmem:[#allocation1 + $0x2] ss:$4 sm:$0xff] %v636_v56  ;;  %v212_v56 = vsel %vm200_vm1, %v210_v63, %v211_v40  ;;  %v633_v58 = vsel %vm200_vm1, %v325_v25, %v505_v43  ;;  %v451_v63 = vrot.slane %v1527_v11, 6  ;;  %v452_v4 = vrot.slane %v1527_v11, 7 }
  0x6a   : > { %782 = vst [vmem:[#allocation1 + $0x3] ss:$4 sm:$0xff] %v637_v47  ;;  %v768_v55 = vld.sshfl [vmem:[#allocation1 + $0x20] sm:$0xff pattern:$0x73625140]  ;;  %v340_v47 = vrot.slane %v1620_v44, 1  ;;  %v1642_v5 = vadd.f32 %v281_v49, %v265_v48  ;;  %v650_v6 = vsel %vm200_vm1, %v1620_v44, %v522_v59  ;;  %v652_v13 = vsel %vm200_vm1, %v341_v0, %v524_v33 }
  0x6b   : > { %773 = vst [vmem:[#allocation1 + $0x20] ss:$4 sm:$0xff] %v630_v46  ;;  %1051 = vmatmul.msk.f32.gmra.mxu1 %vm819_vm2, %v768_v55  ;;  %v257_v1 = vmul.f32 0.25, %v212_v56  ;;  %v329_v10 = vrot.slane %v1534_v16, 4  ;;  %v510_v7 = vperm.slane %v449_v35, 0  ;;  %v330_v9 = vrot.slane %v1534_v16, 5 }
  0x6c   : > { %774 = vst [vmem:[#allocation1 + $0x21] ss:$4 sm:$0xff] %v631_v52  ;;  %v651_v8 = vsel %vm200_vm1, %v340_v47, %v523_v61  ;;  %v511_v12 = vperm.slane %v450_v62, 0  ;;  %v331_v11 = vrot.slane %v1534_v16, 6  ;;  %v512_v17 = vperm.slane %v451_v63, 0 }
  0x6d   : > { %775 = vst [vmem:[#allocation1 + $0x22] ss:$4 sm:$0xff] %v632_v54  ;;  %v653_v18 = vsel %vm200_vm1, %v342_v2, %v525_v3  ;;  %v332_v19 = vrot.slane %v1534_v16, 7  ;;  %v513_v20 = vperm.slane %v452_v4, 0  ;;  %v1655_v21 = vadd.f32 %v265_v48, %v257_v1 }
  0x6e   : > { %776 = vst [vmem:[#allocation1 + $0x23] ss:$4 sm:$0xff] %v633_v58  ;;  %v467_v34 = vrot.slane %v1642_v5, 1  ;;  %v638_v23 = vsel %vm200_vm1, %v329_v10, %v510_v7  ;;  %v468_v15 = vrot.slane %v1642_v5, 2  ;;  %v639_v24 = vsel %vm200_vm1, %v330_v9, %v511_v12 }
  0x6f   : > { %v469_v26 = vrot.slane %v1642_v5, 3  ;;  %v640_v16 = vsel %vm200_vm1, %v331_v11, %v512_v17  ;;  %v641_v30 = vsel %vm200_vm1, %v332_v19, %v513_v20  ;;  %v457_v41 = vrot.slane %v1570_v50, 5 }
  0x70   : > { %v531_v22 = vperm.slane %v467_v34, 0  ;;  %v532_v36 = vperm.slane %v468_v15, 0  ;;  %v349_v39 = vrot.slane %v1655_v21, 3  ;;  %v459_v40 = vrot.slane %v1570_v50, 7 }
  0x71   : > { %v787_v32 = vld.sshfl [vmem:[#allocation1] sm:$0xff pattern:$0x73625140]  ;;  %v533_v38 = vperm.slane %v469_v26, 0  ;;  %v336_v25 = vrot.slane %v1579_v60, 4  ;;  %v337_v46 = vrot.slane %v1579_v60, 5 }
  0x72   : > { %1054 = vmatmul.msk.f32.vlgmr.msra.gmra.mxu2 %vm819_vm2, %v787_v32  ;;  %789 = vst [vmem:[#allocation1] ss:$4 sm:$0xff] %v642_v29  ;;  %v530_v29 = vperm.slane %v1642_v5, 0  ;;  %v348_v32 = vrot.slane %v1655_v21, 2  ;;  %v519_v48 = vperm.slane %v457_v41, 0  ;;  %v338_v52 = vrot.slane %v1579_v60, 6 }
  0x73   : > { %790 = vst [vmem:[#allocation1 + $0x1] ss:$4 sm:$0xff] %v643_v31  ;;  %1052 = vmatmul.msk.f32.gmra.mxu1 %vm819_vm2, %v1575_v57  ;;  %v456_v31 = vrot.slane %v1570_v50, 4  ;;  %v347_v57 = vrot.slane %v1655_v21, 1  ;;  %v339_v54 = vrot.slane %v1579_v60, 7  ;;  %v521_v55 = vperm.slane %v459_v40, 0 }
  0x74   : > { %791 = vst [vmem:[#allocation1 + $0x2] ss:$4 sm:$0xff] %v644_v37  ;;  %v458_v37 = vrot.slane %v1570_v50, 6  ;;  %v660_v49 = vsel %vm200_vm1, %v348_v32, %v532_v36  ;;  %v661_v50 = vsel %vm200_vm1, %v349_v39, %v533_v38  ;;  %v647_v59 = vsel %vm200_vm1, %v337_v46, %v519_v48 }
  0x75   : > { %792 = vst [vmem:[#allocation1 + $0x3] ss:$4 sm:$0xff] %v645_v42  ;;  %v778_v27 = vld.sshfl [vmem:[#allocation1 + $0x20] sm:$0xff pattern:$0x73625140]  ;;  %v658_v42 = vsel %vm200_vm1, %v1655_v21, %v530_v29  ;;  %v518_v43 = vperm.slane %v456_v31, 0  ;;  %v659_v45 = vsel %vm200_vm1, %v347_v57, %v531_v22  ;;  %v649_v61 = vsel %vm200_vm1, %v339_v54, %v521_v55 }
  0x76   : > { %783 = vst [vmem:[#allocation1 + $0x20] ss:$4 sm:$0xff] %v638_v23  ;;  %v520_v53 = vperm.slane %v458_v37, 0  ;;  %v463_v47 = vrot.slane %v1606_v28, 4  ;;  %v464_v60 = vrot.slane %v1606_v28, 5  ;;  %v465_v62 = vrot.slane %v1606_v28, 6 }
  0x77   : > { %784 = vst [vmem:[#allocation1 + $0x21] ss:$4 sm:$0xff] %v639_v24  ;;  %v646_v56 = vsel %vm200_vm1, %v336_v25, %v518_v43  ;;  %v466_v0 = vrot.slane %v1606_v28, 7  ;;  %v343_v33 = vrot.slane %v1620_v44, 4  ;;  %v344_v1 = vrot.slane %v1620_v44, 5 }
  0x78   : > { %785 = vst [vmem:[#allocation1 + $0x22] ss:$4 sm:$0xff] %v640_v16  ;;  %v648_v58 = vsel %vm200_vm1, %v338_v52, %v520_v53  ;;  %v526_v63 = vperm.slane %v463_v47, 0  ;;  %v527_v2 = vperm.slane %v464_v60, 0  ;;  %v345_v3 = vrot.slane %v1620_v44, 6 }
  0x79   : > { %786 = vst [vmem:[#allocation1 + $0x23] ss:$4 sm:$0xff] %v641_v30  ;;  %v528_v4 = vperm.slane %v465_v62, 0  ;;  %v529_v10 = vperm.slane %v466_v0, 0  ;;  %v470_v12 = vrot.slane %v1642_v5, 4  ;;  %v471_v11 = vrot.slane %v1642_v5, 5 }
  0x7a   : > { %v654_v7 = vsel %vm200_vm1, %v343_v33, %v526_v63  ;;  %v655_v28 = vsel %vm200_vm1, %v344_v1, %v527_v2  ;;  %v473_v17 = vrot.slane %v1642_v5, 7  ;;  %v351_v19 = vrot.slane %v1655_v21, 5 }
  0x7b   : > { %1053 = vmatmul.msk.f32.gmra.mxu1 %vm819_vm2, %v778_v27  ;;  %v535_v20 = vperm.slane %v471_v11, 0  ;;  %v352_v34 = vrot.slane %v1655_v21, 6  ;;  %v353_v15 = vrot.slane %v1655_v21, 7 }
  0x7c   : > { %v1650_v14 = vld.sshfl [vmem:[#allocation1] sm:$0xff pattern:$0x73625140]  ;;  %v537_v24 = vperm.slane %v473_v17, 0 }
  0x7d   : > { %799 = vst [vmem:[#allocation1] ss:$4 sm:$0xff] %v650_v6  ;;  %v346_v6 = vrot.slane %v1620_v44, 7  ;;  %v472_v44 = vrot.slane %v1642_v5, 6  ;;  %v663_v5 = vsel %vm200_vm1, %v351_v19, %v535_v20 }
  0x7e   : > { %800 = vst [vmem:[#allocation1 + $0x1] ss:$4 sm:$0xff] %v651_v8  ;;  %v656_v8 = vsel %vm200_vm1, %v345_v3, %v528_v4  ;;  %v665_v29 = vsel %vm200_vm1, %v353_v15, %v537_v24 }
  0x7f   : > { %801 = vst [vmem:[#allocation1 + $0x2] ss:$4 sm:$0xff] %v652_v13  ;;  %v657_v13 = vsel %vm200_vm1, %v346_v6, %v529_v10  ;;  %v536_v23 = vperm.slane %v472_v44, 0 }
  0x80   : > { %802 = vst [vmem:[#allocation1 + $0x3] ss:$4 sm:$0xff] %v653_v18  ;;  %v788_v35 = vld.sshfl [vmem:[#allocation1 + $0x20] sm:$0xff pattern:$0x73625140]  ;;  %v534_v18 = vperm.slane %v470_v12, 0 }
  0x81   : > { %1055 = vmatmul.msk.f32.gmra.mxu2 %vm819_vm2, %v788_v35  ;;  %793 = vst [vmem:[#allocation1 + $0x20] ss:$4 sm:$0xff] %v646_v56  ;;  %v664_v16 = vsel %vm200_vm1, %v352_v34, %v536_v23 }
  0x82   : > { %794 = vst [vmem:[#allocation1 + $0x21] ss:$4 sm:$0xff] %v647_v59 }
  0x83   : > { %795 = vst [vmem:[#allocation1 + $0x22] ss:$4 sm:$0xff] %v648_v58 }
  0x84   : > { %796 = vst [vmem:[#allocation1 + $0x23] ss:$4 sm:$0xff] %v649_v61 }
  0x87   : > { %v807_v51 = vld.sshfl [vmem:[#allocation1] sm:$0xff pattern:$0x73625140] }
  0x88   : > { %809 = vst [vmem:[#allocation1] ss:$4 sm:$0xff] %v658_v42  ;;  %1058 = vmatmul.msk.f32.vlgmr.msra.gmra.mxu3 %vm819_vm2, %v807_v51 }
  0x89   : > { %810 = vst [vmem:[#allocation1 + $0x1] ss:$4 sm:$0xff] %v659_v45  ;;  %1056 = vmatmul.msk.f32.gmra.mxu2 %vm819_vm2, %v1650_v14  ;;  %v350_v14 = vrot.slane %v1655_v21, 4 }
  0x8a   : > { %811 = vst [vmem:[#allocation1 + $0x2] ss:$4 sm:$0xff] %v660_v49 }
  0x8b   : > { %812 = vst [vmem:[#allocation1 + $0x3] ss:$4 sm:$0xff] %v661_v50  ;;  %v798_v9 = vld.sshfl [vmem:[#allocation1 + $0x20] sm:$0xff pattern:$0x73625140]  ;;  %v662_v26 = vsel %vm200_vm1, %v350_v14, %v534_v18 }
  0x8c   : > { %803 = vst [vmem:[#allocation1 + $0x20] ss:$4 sm:$0xff] %v654_v7 }
  0x8d   : > { %804 = vst [vmem:[#allocation1 + $0x21] ss:$4 sm:$0xff] %v655_v28 }
  0x8e   : > { %805 = vst [vmem:[#allocation1 + $0x22] ss:$4 sm:$0xff] %v656_v8 }
  0x8f   : > { %806 = vst [vmem:[#allocation1 + $0x23] ss:$4 sm:$0xff] %v657_v13 }
  0x91   : > { %1057 = vmatmul.msk.f32.gmra.mxu2 %vm819_vm2, %v798_v9 }
  0x92   : > { %v817_v30 = vld.sshfl [vmem:[#allocation1] sm:$0xff pattern:$0x73625140] }
  0x96   : > { %v808_v27 = vld.sshfl [vmem:[#allocation1 + $0x20] sm:$0xff pattern:$0x73625140] }
  0x97   : > { %813 = vst [vmem:[#allocation1 + $0x20] ss:$4 sm:$0xff] %v662_v26  ;;  %1059 = vmatmul.msk.f32.gmra.mxu3 %vm819_vm2, %v808_v27 }
  0x98   : > { %814 = vst [vmem:[#allocation1 + $0x21] ss:$4 sm:$0xff] %v663_v5 }
  0x99   : > { %815 = vst [vmem:[#allocation1 + $0x22] ss:$4 sm:$0xff] %v664_v16 }
  0x9a   : > { %816 = vst [vmem:[#allocation1 + $0x23] ss:$4 sm:$0xff] %v665_v29 }
  0x9f   : > { %1060 = vmatmul.msk.f32.gmra.mxu3 %vm819_vm2, %v817_v30 }
  0xa1   : > { %v818_v21 = vld.sshfl [vmem:[#allocation1 + $0x20] sm:$0xff pattern:$0x73625140] }
  0xa7   : > { %1061 = vmatmul.msk.f32.gmra.mxu3 %vm819_vm2, %v818_v21 }
  0xc3   : > { %v869_v31 = vpop.f32.mrf.mxu0 }
  0xc4   : > { %918 = vst.msk [vmem:[%s1721_s20] sm:$0xff] %vm917_vm3, %v869_v31 }
  0xd0   : > { %v872_v22 = vpop.f32.mrf.mxu0 }
  0xd1   : > { %919 = vst.msk [vmem:[%s1721_s20 + $0x8] sm:$0xff] %vm917_vm3, %v872_v22 }
  0xd8   : > { %v875_v36 = vpop.f32.mrf.mxu0 }
  0xd9   : > { %v881_v57 = vpop.f32.mrf.mxu1  ;;  %920 = vst.msk [vmem:[%s1721_s20 + $0x10] sm:$0xff] %vm917_vm3, %v875_v36 }
  0xda   : > { %922 = vst.msk [vmem:[%s1721_s20 + $0x20] sm:$0xff] %vm917_vm3, %v881_v57 }
  0xe0   : > { %v878_v38 = vpop.f32.mrf.mxu0 }
  0xe1   : > { %921 = vst.msk [vmem:[%s1721_s20 + $0x18] sm:$0xff] %vm917_vm3, %v878_v38 }
  0xe8   : > { %v884_v41 = vpop.f32.mrf.mxu1 }
  0xe9   : > { %923 = vst.msk [vmem:[%s1721_s20 + $0x28] sm:$0xff] %vm917_vm3, %v884_v41 }
  0xf0   : > { %v887_v37 = vpop.f32.mrf.mxu1 }
  0xf1   : > { %924 = vst.msk [vmem:[%s1721_s20 + $0x30] sm:$0xff] %vm917_vm3, %v887_v37 }
  0xf5   : > { %v893_v32 = vpop.f32.mrf.mxu2 }
  0xf6   : > { %926 = vst.msk [vmem:[%s1721_s20 + $0x40] sm:$0xff] %vm917_vm3, %v893_v32 }
  0xf8   : > { %v890_v40 = vpop.f32.mrf.mxu1 }
  0xf9   : > { %925 = vst.msk [vmem:[%s1721_s20 + $0x38] sm:$0xff] %vm917_vm3, %v890_v40 }
 0x104   : > { %v896_v42 = vpop.f32.mrf.mxu2 }
 0x105   : > { %927 = vst.msk [vmem:[%s1721_s20 + $0x48] sm:$0xff] %vm917_vm3, %v896_v42 }
 0x10b   : > { %v905_v39 = vpop.f32.mrf.mxu3 }
 0x10c   : > { %930 = vst.msk [vmem:[%s1721_s20 + $0x60] sm:$0xff] %vm917_vm3, %v905_v39  ;;  %v899_v25 = vpop.f32.mrf.mxu2 }
 0x10d   : > { %928 = vst.msk [vmem:[%s1721_s20 + $0x50] sm:$0xff] %vm917_vm3, %v899_v25 }
 0x114   : > { %v902_v43 = vpop.f32.mrf.mxu2 }
 0x115   : > { %929 = vst.msk [vmem:[%s1721_s20 + $0x58] sm:$0xff] %vm917_vm3, %v902_v43 }
 0x11a   : > { %v908_v45 = vpop.f32.mrf.mxu3 }
 0x11b   : > { %931 = vst.msk [vmem:[%s1721_s20 + $0x68] sm:$0xff] %vm917_vm3, %v908_v45 }
 0x122   : > { %v911_v46 = vpop.f32.mrf.mxu3 }
 0x123   : > { %932 = vst.msk [vmem:[%s1721_s20 + $0x70] sm:$0xff] %vm917_vm3, %v911_v46 }
 0x12a   : > { %v914_v48 = vpop.f32.mrf.mxu3 }
 0x12b   : > { %933 = vst.msk [vmem:[%s1721_s20 + $0x78] sm:$0xff] %vm917_vm3, %v914_v48 }
 0x12c   : > { %1226 = shalt.err (!%p1223_p10)
}
 0x12d   : > { %s1274_s30 = smov 128   ;;  %s1275_s6 = smov 8  }
 0x12e   : > { %1084 = dma.vmem_to_hbm [thread:$0]  (%p1360_p3), %s949_s18, 2048, %s951_s19, %s935_s21, %s1274_s30, %s1274_s30, %s1275_s6  }
 0x12f PF: > { %s965_s7 = sand.u32 1, %s1257_s9   ;;  %p1797_p12 = scmp.ge.s32.totalorder %s1269_s12, 2 }
 0x130   : > { %s966_s14 = scalar_lea.sflag [#allocation4], %s965_s7 }
 0x131   : > { %p1095_p13 = pnand %p1797_p12, %p1326_p6 }
 0x133   : > { %p1096_p0 = pneg %p1095_p13 }
 0x135   : > { %1252 = dma.done.wait (%p1096_p0), %s966_s14, 2048  }
 0x136   : > { %1254 = vsyncadd (%p1096_p0), %s966_s14, 4294965248  ;;  %p16_p5 = scmp.ge.s32.totalorder %s1344_s23, 4   ;;  %s1798_s9 = smov %s1261_s10 }
 0x137   : > { %s1799_s10 = smov %s1265_s11  ;;  %s1800_s11 = smov %s1356_s28 }
 0x138   : > { %s1801_s12 = smov %s1344_s23  ;;  %18 = sbr.rel (!%p16_p5) target bundleno = 6 (0x6), region = 84 }
 0x13d   :  { %972 = vsyncpa [#allocation3], 1 }
 0x13e   :  { %974 = vsyncpa [#allocation3 + $0x1], 1 }
 0x13f   :  { %975 = vsyncpa [#allocation6], 1 }
 0x140   :  { %976 = vsyncpa [#allocation4], 1 }
 0x141   :  { %978 = vsyncpa [#allocation4 + $0x1], 1 }

</bundles_post_ra>
